<compile_context>
chip_gen: v6e
topology: v6e:2x2x1
jax: 0.10.0
libtpu: 0.0.40
codegen_flags: <defaults>
</compile_context>

<pallas_src>
import functools

import jax
import jax.numpy as jnp
from jax import lax
from jax.experimental import pallas as pl
from jax.experimental.pallas import tpu as pltpu


def _round_up(x, m):
    return ((x + m - 1) // m) * m


def _normalize_rows(x, eps=1e-12):
    # torch.nn.functional.normalize(x, dim=1): x / max(||x||_2, eps)
    n = jnp.maximum(jnp.linalg.norm(x, axis=1, keepdims=True), eps)
    return x / n


# -----------------------------------------------------------------------------
# Kernel 1: cosine similarity against pre-normalized, pre-transposed keys.
#   sim[b, k] = <q_b / max(||q_b||, 1e-12), Kn_k>       (padded cols -> -1e30)
# -----------------------------------------------------------------------------
def _cos_sim_kernel(pool_size, q_ref, knt_ref, sim_ref):
    q = q_ref[...].astype(jnp.float32)                 # (TB, D)
    # clamp ||q||^2 >= 1e-24  ==  clamp ||q|| >= 1e-12  (torch F.normalize)
    sq = jnp.sum(q * q, axis=1, keepdims=True)
    qn = q * lax.rsqrt(jnp.maximum(sq, 1e-24))         # rsqrt -> EUP, mul -> VPU
    knt = knt_ref[...]                                 # (D, P_pad), rows pre-normalized
    sim = lax.dot_general(                             # plain (TB,D) @ (D,P_pad)
        qn.astype(knt.dtype), knt,
        dimension_numbers=(((1,), (0,)), ((), ())),
        preferred_element_type=jnp.float32)
    if sim.shape[1] > pool_size:
        # Large negative bias on padded columns so top_k can run on the padded
        # output directly (no [:, :pool_size] slice in the wrapper).
        col = lax.broadcasted_iota(jnp.int32, sim.shape, 1)
        sim = jnp.where(col < pool_size, sim, jnp.float32(-1e30))
    sim_ref[...] = sim


def cosine_similarity_pallas(x_query, keys_norm_t, pool_size, *, block_b=256):
    """x_query: (B, D); keys_norm_t: (D, P_pad), P_pad % 128 == 0.

    Returns (B, P_pad) f32 similarities with padded columns set to -1e30.
    """
    B, D = x_query.shape
    D2, P_pad = keys_norm_t.shape
    assert D == D2
    if B <= 8:
        TB = B                                          # exact, single step
    else:
        # >=2 grid steps so both v7x TensorCores get work; 8-aligned tiles.
        TB = min(block_b, _round_up(pl.cdiv(B, 2), 8))
    grid = (pl.cdiv(B, TB),)
    return pl.pallas_call(
        functools.partial(_cos_sim_kernel, pool_size),
        out_shape=jax.ShapeDtypeStruct((B, P_pad), jnp.float32),
        grid=grid,
        in_specs=[
            pl.BlockSpec((TB, D), lambda i: (i, 0)),    # query tile (pipelined)
            pl.BlockSpec((D, P_pad), lambda i: (0, 0)), # keys stay resident
        ],
        out_specs=pl.BlockSpec((TB, P_pad), lambda i: (i, 0)),  # lane-dense store
        compiler_params=pltpu.CompilerParams(
            dimension_semantics=("parallel",)),
    )(x_query, keys_norm_t)


# -----------------------------------------------------------------------------
# Kernel 2: data-dependent gather  out[n] = p[idx[n]]  with a VMEM-resident
# prompt pool.  Indices are scalar-prefetched into SMEM; the output is tiled
# over flattened (B*top_k) rows so writeback uses the normal double-buffered
# pipeline (no per-row DMA round trips).
# -----------------------------------------------------------------------------
def _gather_kernel(chunk, pool, idx_ref, p_ref, out_ref):
    # idx_ref: SMEM (N_pad,) int32 ; p_ref: VMEM (pool, Lp, D) resident
    # out_ref: VMEM (chunk, Lp, D)
    base = pl.program_id(0) * chunk
    for j in range(chunk):                              # static unroll
        idx = idx_ref[base + j]
        idx = jnp.minimum(jnp.maximum(idx, 0), pool - 1)  # guard OOB VMEM reads
        out_ref[j] = p_ref[idx]


def gather_prompts_pallas(p, k_idx, *, chunk=32):
    """p: (pool, Lp, D); k_idx: (B, top_k) int -> (B, top_k, Lp, D) = p[k_idx]."""
    B, K = k_idx.shape
    pool, Lp, D = p.shape
    N = B * K
    chunk = min(chunk, N)
    N_pad = _round_up(N, chunk)
    idx_flat = k_idx.reshape(-1).astype(jnp.int32)
    if N_pad != N:
        idx_flat = jnp.pad(idx_flat, (0, N_pad - N))    # pad with valid index 0
    out = pl.pallas_call(
        functools.partial(_gather_kernel, chunk, pool),
        out_shape=jax.ShapeDtypeStruct((N_pad, Lp, D), p.dtype),
        grid_spec=pltpu.PrefetchScalarGridSpec(
            num_scalar_prefetch=1,
            grid=(N_pad // chunk,),
            in_specs=[pl.BlockSpec((pool, Lp, D), lambda i, idx: (0, 0, 0))],
            out_specs=pl.BlockSpec((chunk, Lp, D), lambda i, idx: (i, 0, 0)),
        ),
        compiler_params=pltpu.CompilerParams(
            dimension_semantics=("parallel",)),
    )(idx_flat, p)
    if N_pad != N:
        out = out[:N]
    return out.reshape(B, K, Lp, D)


# -----------------------------------------------------------------------------
# L2P module (JAX port)
# -----------------------------------------------------------------------------
def tensor_prompt(key, *shape):
    # torch.nn.init.uniform_ -> U[0, 1)
    return jax.random.uniform(key, shape, dtype=jnp.float32)


class L2P:
    def __init__(self, emb_d, n_tasks, prompt_pool, prompt_length, prompt_mode,
                 top_k=None, layer_ids=None, key_dim=768, rng_key=None,
                 key_dtype=jnp.float32):
        assert prompt_mode in ('prompt_tune', 'prefix_tune')
        self.task_count = 0
        self.emb_d = emb_d
        self.key_d = key_dim
        self.n_tasks = n_tasks
        self.prompt_mode = prompt_mode
        self.top_k = 5 if top_k is None else top_k
        self.layer_ids = [0] if layer_ids is None else layer_ids
        self.p_length = int(prompt_length)
        self.pool_size = int(prompt_pool)
        self.pool_pad = _round_up(self.pool_size, 128)   # lane-dense sim output
        self.key_dtype = key_dtype                       # f32 (exact) or bf16 (faster MXU)

        rng_key = jax.random.PRNGKey(1234) if rng_key is None else rng_key
        self.params = {}
        for e in self.layer_ids:
            rng_key, kp, kk = jax.random.split(rng_key, 3)
            self.params[f'e_p_{e}'] = tensor_prompt(
                kp, self.pool_size, self.p_length, emb_d)
            self.params[f'e_k_{e}'] = tensor_prompt(
                kk, self.pool_size, self.key_d)
        # Keys are parameters: normalize, zero-pad to pool_pad rows and
        # TRANSPOSE to (key_dim, pool_pad) once, outside the per-forward hot
        # path.  Call refresh_key_cache() if the raw keys are ever updated.
        self._norm_keys_t = {}
        self.refresh_key_cache()

    def refresh_key_cache(self):
        for e in self.layer_ids:
            kn = _normalize_rows(self.params[f'e_k_{e}'])
            kn = jnp.pad(kn, ((0, self.pool_pad - self.pool_size), (0, 0)))
            self._norm_keys_t[e] = jnp.asarray(kn.T, dtype=self.key_dtype)

    def process_task_count(self):
        self.task_count += 1

    def forward(self, x_querry, l, x_block, train=False, task_id=None):
        p_return = None
        loss = 0
        if l in self.layer_ids:
            B, C = x_querry.shape
            p = self.params[f'e_p_{l}']                          # (pool, Lp, emb_d)

            # --- hot path 1: query-normalize + MXU matmul in Pallas ---
            # (B, pool_pad); padded columns are -1e30 so top_k ignores them.
            cos_sim = cosine_similarity_pallas(
                x_querry, self._norm_keys_t[l], self.pool_size)

            # --- top-k selection (plain JAX; matches torch.topk largest/sorted) ---
            _, k_idx = jax.lax.top_k(cos_sim, self.top_k)        # (B, top_k)

            if train:
                # Faithful to the original (quirky) indexing:
                # cos_sim[:, k_idx] has shape (B, B, top_k); k_idx < pool_size
                # so padded (-1e30) columns are never touched.
                loss = jnp.sum(1.0 - cos_sim[:, k_idx])

            # --- hot path 2: VMEM-resident gather in Pallas ---
            P_ = gather_prompts_pallas(p, k_idx)                 # (B, top_k, Lp, emb_d)

            if self.prompt_mode == 'prefix_tune':
                i = int(self.p_length / 2)
                Ek = P_[:, :, :i, :].reshape((B, -1, self.emb_d))
                Ev = P_[:, :, i:, :].reshape((B, -1, self.emb_d))
                p_return = [Ek, Ev]
            elif self.prompt_mode == 'prompt_tune':
                p_return = P_.reshape(B, -1, self.emb_d)
        return (p_return, loss, x_block)


# -----------------------------------------------------------------------------
# Pure-JAX reference for verification
# -----------------------------------------------------------------------------
def _ref_forward(x_querry, K, p, top_k, emb_d, prompt_mode, p_length, train):
    cos_sim = jnp.einsum('bj,kj->bk', _normalize_rows(x_querry), _normalize_rows(K))
    _, k_idx = jax.lax.top_k(cos_sim, top_k)
    loss = jnp.sum(1.0 - cos_sim[:, k_idx]) if train else 0.0
    P_ = p[k_idx]
    B = x_querry.shape[0]
    if prompt_mode == 'prefix_tune':
        i = p_length // 2
        out = [P_[:, :, :i, :].reshape((B, -1, emb_d)),
               P_[:, :, i:, :].reshape((B, -1, emb_d))]
    else:
        out = P_.reshape(B, -1, emb_d)
    return out, loss, cos_sim


if __name__ == "__main__":
    # Small, module-consistent shapes.
    B = 2
    emb_d = 32
    key_dim = 32
    pool_size = 16
    p_length = 8
    top_k = 5
    n_tasks = 2

    root = jax.random.PRNGKey(0)
    k_x, k_blk, k_params, k_x2 = jax.random.split(root, 4)
    x_querry = jax.random.normal(k_x, (B, key_dim), dtype=jnp.float32)
    x_block = jax.random.normal(k_blk, (B, 8, emb_d), dtype=jnp.float32)

    model = L2P(emb_d=emb_d, n_tasks=n_tasks, prompt_pool=pool_size,
                prompt_length=p_length, prompt_mode='prompt_tune',
                top_k=top_k, layer_ids=[0], key_dim=key_dim, rng_key=k_params)

    p_return, loss, x_blk_out = model.forward(
        x_querry, l=0, x_block=x_block, train=True)
    jax.block_until_ready(p_return)
    jax.block_until_ready(loss)

    # Verify against pure-JAX reference.
    ref_out, ref_loss, ref_cos = _ref_forward(
        x_querry, model.params['e_k_0'], model.params['e_p_0'],
        top_k, emb_d, 'prompt_tune', p_length, train=True)
    assert p_return.shape == (B, top_k * p_length, emb_d)
    assert jnp.allclose(p_return, ref_out, atol=1e-5, rtol=1e-5)
    assert jnp.allclose(loss, ref_loss, atol=1e-4, rtol=1e-5)

    # Larger batch: exercises the multi-step tiled cos-sim (partial last block)
    # and the padded/sliced gather path.
    B2 = 24
    x_q2 = jax.random.normal(k_x2, (B2, key_dim), dtype=jnp.float32)
    x_blk2 = jnp.zeros((B2, 8, emb_d), dtype=jnp.float32)
    out2, loss2, _ = model.forward(x_q2, l=0, x_block=x_blk2, train=True)
    jax.block_until_ready(out2)
    ref_out2, ref_loss2, _ = _ref_forward(
        x_q2, model.params['e_k_0'], model.params['e_p_0'],
        top_k, emb_d, 'prompt_tune', p_length, train=True)
    assert out2.shape == (B2, top_k * p_length, emb_d)
    assert jnp.allclose(out2, ref_out2, atol=1e-5, rtol=1e-5)
    assert jnp.allclose(loss2, ref_loss2, atol=1e-3, rtol=1e-5)

    # Also exercise prefix_tune mode.
    model_pf = L2P(emb_d=emb_d, n_tasks=n_tasks, prompt_pool=pool_size,
                   prompt_length=p_length, prompt_mode='prefix_tune',
                   top_k=top_k, layer_ids=[0], key_dim=key_dim, rng_key=k_params)
    (Ek, Ev), loss_pf, _ = model_pf.forward(
        x_querry, l=0, x_block=x_block, train=False)
    jax.block_until_ready(Ek)
    jax.block_until_ready(Ev)
    assert Ek.shape == (B, top_k * (p_length // 2), emb_d)
    assert Ev.shape == (B, top_k * (p_length // 2), emb_d)
    assert loss_pf == 0

    # Optional bf16 key cache (halves MXU work / key VMEM): loose value check
    # only (bf16 keys are not bit-identical to the f32 reference).
    model_bf = L2P(emb_d=emb_d, n_tasks=n_tasks, prompt_pool=pool_size,
                   prompt_length=p_length, prompt_mode='prompt_tune',
                   top_k=top_k, layer_ids=[0], key_dim=key_dim,
                   rng_key=k_params, key_dtype=jnp.bfloat16)
    cs_bf = cosine_similarity_pallas(
        x_querry, model_bf._norm_keys_t[0], pool_size)[:, :pool_size]
    jax.block_until_ready(cs_bf)
    assert jnp.allclose(cs_bf, ref_cos, atol=2e-2)
    out_bf, _, _ = model_bf.forward(x_querry, l=0, x_block=x_block, train=False)
    jax.block_until_ready(out_bf)
    assert out_bf.shape == (B, top_k * p_length, emb_d)

    # Layer not in layer_ids -> passthrough.
    none_out, loss0, _ = model.forward(x_querry, l=3, x_block=x_block)
    assert none_out is None and loss0 == 0

    print("KERNEL_OK")
</pallas_src>

<mosaic_0001>
module attributes {stable_mosaic.version = 11 : i64} {
  func.func @_cos_sim_kernel(%arg0: i32, %arg1: memref<2x32xf32, #tpu.memory_space<vmem>>, %arg2: memref<32x128xf32, #tpu.memory_space<vmem>>, %arg3: memref<2x128xf32, #tpu.memory_space<vmem>>) attributes {dimension_semantics = [#tpu.dimension_semantics<parallel>], iteration_bounds = array<i64: 1>, scalar_prefetch = 0 : i64, scratch_operands = 0 : i64, tpu.core_type = #tpu.core_type<tc>, window_params = [{transform_indices = @transform_0, window_bounds = array<i64: 2, 32>}, {pipeline_mode = #tpu.pipeline_mode<synchronous>, transform_indices = @transform_1, window_bounds = array<i64: 32, 128>}, {transform_indices = @transform_2, window_bounds = array<i64: 2, 128>}]} {
    %c0 = arith.constant 0 : index
    %c0_0 = arith.constant 0 : index
    %0 = vector.load %arg1[%c0, %c0_0] : memref<2x32xf32, #tpu.memory_space<vmem>>, vector<2x32xf32>
    %1 = arith.mulf %0, %0 : vector<2x32xf32>
    %cst = arith.constant dense<0.000000e+00> : vector<2xf32>
    %2 = vector.multi_reduction <add>, %1, %cst [1] : vector<2x32xf32> to vector<2xf32>
    %3 = vector.shape_cast %2 : vector<2xf32> to vector<2x1xf32>
    %cst_1 = arith.constant 1.000000e-24 : f32
    %4 = vector.broadcast %cst_1 : f32 to vector<2x1xf32>
    %5 = arith.maximumf %3, %4 : vector<2x1xf32>
    %6 = math.rsqrt %5 : vector<2x1xf32>
    %7 = vector.broadcast %6 : vector<2x1xf32> to vector<2x32xf32>
    %8 = arith.mulf %0, %7 : vector<2x32xf32>
    %c0_2 = arith.constant 0 : index
    %c0_3 = arith.constant 0 : index
    %9 = vector.load %arg2[%c0_2, %c0_3] : memref<32x128xf32, #tpu.memory_space<vmem>>, vector<32x128xf32>
    %cst_4 = arith.constant dense<0.000000e+00> : vector<2x128xf32>
    %10 = tpu.matmul %8, %9, %cst_4 {dimension_numbers = #tpu.dot_dimension_numbers<[1], [0], [0], [1], [0, 0, 1, 1], [], []>} : vector<2x32xf32>, vector<32x128xf32>, vector<2x128xf32> -> vector<2x128xf32>
    %11 = tpu.iota {dimensions = array<i32: 1>} : vector<2x128xi32>
    %c16_i32 = arith.constant 16 : i32
    %12 = vector.broadcast %c16_i32 : i32 to vector<2x128xi32>
    %13 = arith.cmpi slt, %11, %12 : vector<2x128xi32>
    %cst_5 = arith.constant -1.000000e+30 : f32
    %14 = vector.broadcast %cst_5 : f32 to vector<2x128xf32>
    %15 = arith.select %13, %10, %14 : vector<2x128xi1>, vector<2x128xf32>
    %c0_6 = arith.constant 0 : index
    %c0_7 = arith.constant 0 : index
    %16 = vector.load %arg3[%c0_6, %c0_7] : memref<2x128xf32, #tpu.memory_space<vmem>>, vector<2x128xf32>
    tpu.vector_store %arg3[%c0_6, %c0_7], %15 {strides = array<i32>} : memref<2x128xf32, #tpu.memory_space<vmem>>, vector<2x128xf32>,
    return
  }
  func.func @transform_0(%arg0: i32) -> (i32, i32) {
    %c0_i32 = arith.constant 0 : i32
    %c0_i32_0 = arith.constant 0 : i32
    return %arg0, %c0_i32 : i32, i32
  }
  func.func @transform_1(%arg0: i32) -> (i32, i32) {
    %c0_i32 = arith.constant 0 : i32
    %c0_i32_0 = arith.constant 0 : i32
    %c0_i32_1 = arith.constant 0 : i32
    return %c0_i32, %c0_i32_0 : i32, i32
  }
  func.func @transform_2(%arg0: i32) -> (i32, i32) {
    %c0_i32 = arith.constant 0 : i32
    %c0_i32_0 = arith.constant 0 : i32
    return %arg0, %c0_i32 : i32, i32
  }
}

</mosaic_0001>

<bundles_post_ra>
// kernel: tpu_custom_call.1
= control target key start
LH: loop header
LB: loop body
LE: loop exit
PB: predicated region body
PF: predicated region fallthrough
CT: control target
= control target key end

     0   :  { %7 = vsyncpa [#allocation3], 0  ;;  %s269_s0 = inlined_call_operand.hbm [shape: f32[2,32], index: 0, kind: input, shape index: {}]   ;;  %s270_s1 = inlined_call_operand.hbm [shape: f32[32,128], index: 1, kind: input, shape index: {}]   ;;  %s271_s2 = inlined_call_operand.hbm [shape: f32[2,128], index: 2, kind: output, shape index: {}]  }
   0x1   :  { %8 = vsyncpa [#allocation6], 0 }
   0x2   :  { %9 = vsyncpa [#allocation4], 0  ;;  %s238_s9 = smov [#allocation2]   ;;  %s239_s11 = smov [#allocation5]  }
   0x3   :  { %s16_s10 = sshll.u32 %s238_s9, 4  ;;  %s25_s12 = sshll.u32 %s239_s11, 4  ;;  %s17_s10 = int_to_ptr.vmem [resolvable:$true] %s16_s10  ;;  %s26_s12 = int_to_ptr.vmem [resolvable:$true] %s25_s12 }
   0x4   :  { %s180_s13 = scalar_lea.vmem %s17_s10, 32  ;;  %p185_p1 = scmp.lt.s32.totalorder %s17_s10, %s17_s10 }
   0x5   :  { %p181_p0 = scmp.ne.s32.totalorder %s17_s10, %s180_s13  ;;  %p186_p2 = scmp.lt.s32.totalorder %s180_s13, %s180_s13 }
   0x7   :  { %p187_p3 = por %p186_p2, %p185_p1 }
   0x9   :  { %p188_p4 = pnand %p187_p3, %p181_p0 }
   0xb   :  { %191 = shalt.err (!%p188_p4)
}
   0xc   :  { %19 = dma.hbm_to_vmem [thread:$0]  %s269_s0, 32, %s17_s10, [#allocation3]  }
   0xd   :  { %s200_s16 = scalar_lea.vmem %s26_s12, 512  ;;  %p205_p6 = scmp.lt.s32.totalorder %s26_s12, %s26_s12 }
   0xe   :  { %p201_p5 = scmp.ne.s32.totalorder %s26_s12, %s200_s16  ;;  %p206_p7 = scmp.lt.s32.totalorder %s200_s16, %s200_s16 }
  0x10   :  { %p207_p8 = por %p206_p7, %p205_p6 }
  0x12   :  { %p208_p9 = pnand %p207_p8, %p201_p5 }
  0x14   :  { %211 = shalt.err (!%p208_p9)
}
  0x15   :  { %s240_s17 = smov 128   ;;  %s241_s18 = smov 8  }
  0x16   :  { %31 = dma.hbm_to_vmem [thread:$0]  %s270_s1, 512, %s26_s12, [#allocation6], %s240_s17, %s240_s17, %s241_s18  }
  0x17   :  { %232 = dma.done.wait [#allocation3], 32  }
  0x18   :  { %233 = vsyncadd [#allocation3], 4294967264 }
  0x19   :  { %234 = dma.done.wait [#allocation6], 512  }
  0x1a   :  { %235 = vsyncadd [#allocation6], 4294966784  ;;  %v38_v0 = vld [vmem:[#allocation2] sm:$0x3]  ;;  %vm40_vm0 = vcmask 254976   ;;  %v242_v4 = vmov 0.0   ;;  %v125_v12 = vlaneseq }
  0x1b   :  { %v39_v1 = vmul.f32 %v38_v0, %v38_v0  ;;  %v50_v3 = vld [vmem:[#allocation5 + $0x18] sm:$0xff]  ;;  %152 = vmatprep.subr.mxu0 %v242_v4  ;;  %v49_v5 = vld [vmem:[#allocation5 + $0x10] sm:$0xff]  ;;  %vm243_vm1 = vmmov 0   ;;  %v48_v6 = vld [vmem:[#allocation5 + $0x8] sm:$0xff]  ;;  %vm51_vm2 = vcmask 261120   ;;  %s244_s0 = smov [#allocation7]  }
  0x1c   :  { %160 = vmatprep.mubr.msk.f32.mxu0 %vm243_vm1, %v242_v4  ;;  %153 = vmatpush3.msra.mxu0 %v50_v3  ;;  %v47_v7 = vld [vmem:[#allocation5] sm:$0xff]  ;;  %v126_v13 = vand.u32 127, %v125_v12  ;;  %s136_s1 = sshll.u32 %s244_s0, 4  ;;  %s137_s1 = int_to_ptr.vmem [resolvable:$true] %s136_s1 }
  0x1d   :  { %v41_v2 = vsel %vm40_vm0, %v39_v1, 0.0  ;;  %154 = vmatprep.subr.mxu0 %v242_v4  ;;  %s212_s21 = scalar_lea.vmem %s137_s1, 32  ;;  %p217_p11 = scmp.lt.s32.totalorder %s137_s1, %s137_s1 }
  0x1e   :  { %42 = vadd.xlane.f32.xlu0 %v41_v2  ;;  %155 = vmatpush3.msra.mxu0 %v49_v5  ;;  %vm127_vm3 = vcmp.lt.s32.totalorder %v126_v13, 16  ;;  %p213_p10 = scmp.ne.s32.totalorder %s137_s1, %s212_s21  ;;  %p218_p12 = scmp.lt.s32.totalorder %s212_s21, %s212_s21 }
  0x1f   :  { %156 = vmatprep.subr.mxu0 %v242_v4 }
  0x20   :  { %157 = vmatpush3.msra.mxu0 %v48_v6  ;;  %p219_p13 = por %p218_p12, %p217_p11 }
  0x21   :  { %158 = vmatprep.subr.mxu0 %v242_v4 }
  0x22   :  { %159 = vmatpush3.msra.mxu0 %v47_v7  ;;  %p220_p0 = pnand %p219_p13, %p213_p10 }
  0xa7   :  { %v43_v8 = vpop.xlane.xlu0 %42 }
  0xa8   :  { %v44_v9 = vmax.f32 %v43_v8, 1e-24 }
  0xaa   :  { %170 = vrsqrt.f32 %v44_v9 }
  0xb7   :  { %v171_v10 = vpop.eup %170 }
  0xb8   :  { %v46_v11 = vmul.f32 %v171_v10, %v38_v0 }
  0xba   :  { %161 = vmatmul.mubr.msk.f32.vlgmr.msra.gmra.mxu0 %vm51_vm2, %v46_v11 }
 0x17a   :  { %v121_v14 = vpop.f32.mrf.mxu0 }
 0x17b   :  { %v128_v15 = vsel %vm127_vm3, %v121_v14, -1e+30 }
 0x17c   :  { %129 = vst [vmem:[#allocation7] sm:$0x3] %v128_v15  ;;  %v162_v16 = vpop.f32.mrf.mxu0 }
 0x17d   :  { %223 = shalt.err (!%p220_p0)
}
 0x17e   :  { %139 = dma.vmem_to_hbm [thread:$0]  %s137_s1, 32, %s271_s2, [#allocation4]  }
 0x17f   :  { %236 = dma.done.wait [#allocation4], 32  }
 0x180   :  { %237 = vsyncadd [#allocation4], 4294967264 }
 0x181   :  { %143 = vsyncpa [#allocation3], 1 }
 0x182   :  { %144 = vsyncpa [#allocation6], 1 }
 0x183   :  { %145 = vsyncpa [#allocation4], 1 }

</bundles_post_ra>
